<compile_context>
chip_gen: v6e
topology: v6e:2x2x1
jax: 0.10.0
libtpu: 0.0.40
codegen_flags: <defaults>
</compile_context>

<pallas_src>
import numpy as np

import jax
import jax.numpy as jnp
from jax import lax
from jax.experimental import pallas as pl
from jax.experimental.pallas import tpu as pltpu

N_VOCAB = 5
LANES = 128
DEFAULT_RAYS_PER_TILE = 512 * LANES   # 512 sublane-rows (64K rays) per step

NUM_IN = 3     # i, j, img_id(float)
NUM_OUT = 12   # rays_o(3) rays_d(3) near(1) far(1) img_id(1) viewdirs(3)
NUM_TBL = 12   # per-image: C (3x3, rays_d = C @ [i,j,1]) + rays_o (3)


# --------------------------------- kernel ------------------------------------

def _make_ray_kernel(bbox, near_min, far_max, n_vocab):
    # bbox / near / far are host-side constants (the torch module takes bbox
    # as numpy), baked into the closure as Python floats.
    bbox = tuple((float(bbox[k][0]), float(bbox[k][1])) for k in range(3))
    near_min = float(near_min)
    far_max = float(far_max)

    def ray_kernel(tbl_ref, feat_ref, out_ref):
        # per-ray data: full (SUB, 128) slabs
        i = feat_ref[0]
        j = feat_ref[1]
        img = feat_ref[2]

        # Per-ray parameter resolution from the tiny per-image table in SMEM:
        # (n_vocab-1) shared compares, then (n_vocab-1) selects per parameter
        # (scalar operands splat from SMEM).
        cmp = [img == float(v) for v in range(n_vocab - 1)]

        def resolve(p):
            if n_vocab == 1:
                return jnp.full_like(img, tbl_ref[0, p])
            acc = jnp.where(cmp[n_vocab - 2], tbl_ref[n_vocab - 2, p],
                            tbl_ref[n_vocab - 1, p])
            for v in range(n_vocab - 3, -1, -1):
                acc = jnp.where(cmp[v], tbl_ref[v, p], acc)
            return acc

        # rays_d = C @ [i, j, 1]; dR@R and the intrinsics (+df) were folded
        # into C per image on the host (re-associated: no 3x3 M is ever live).
        rays_d = []
        for r in range(3):
            ci = resolve(3 * r + 0)
            cj = resolve(3 * r + 1)
            c1 = resolve(3 * r + 2)
            rays_d.append(ci * i + cj * j + c1)
        rays_o = [resolve(9 + k) for k in range(3)]

        # Direct lane-dense per-row stores.
        for k in range(3):
            out_ref[k] = rays_o[k]
            out_ref[3 + k] = rays_d[k]
        out_ref[8] = img                              # img_id

        # depth range against bbox (slab test, clamp to [0, 100]); one
        # full-precision reciprocal per axis reused for both slab planes.
        near_v = None
        far_v = None
        for k in range(3):
            d = rays_d[k]
            d_nz = jnp.where(jnp.abs(d) < 1e-9, jnp.full_like(d, 1e-9), d)
            inv_d = pl.reciprocal(d_nz)               # approx=False
            bmin, bmax = bbox[k]
            p1 = (bmin - rays_o[k]) * inv_d
            p2 = (bmax - rays_o[k]) * inv_d
            lo = jnp.clip(jnp.minimum(p1, p2), 0.0, 100.0)
            hi = jnp.clip(jnp.maximum(p1, p2), 0.0, 100.0)
            near_v = lo if near_v is None else jnp.maximum(near_v, lo)
            far_v = hi if far_v is None else jnp.minimum(far_v, hi)
        out_ref[6] = jnp.maximum(near_v, near_min)    # torch.clamp(near_d, near)
        out_ref[7] = jnp.clip(far_v, 0.0, far_max)    # torch.clamp(far_d, 0, far)

        # viewdirs = rays_d * rsqrt(||rays_d||^2)
        inv_n = lax.rsqrt(rays_d[0] * rays_d[0] + rays_d[1] * rays_d[1]
                          + rays_d[2] * rays_d[2])
        for k in range(3):
            out_ref[9 + k] = rays_d[k] * inv_n

    return ray_kernel


# --------------------------------- wrapper -----------------------------------

def _axis_angle_to_matrix(w):
    wx, wy, wz = w[..., 0], w[..., 1], w[..., 2]
    theta2 = wx * wx + wy * wy + wz * wz
    theta = jnp.sqrt(theta2)
    small = theta2 < 1e-8
    safe = jnp.maximum(theta, 1e-12)
    A = jnp.where(small, 1.0 - theta2 / 6.0, jnp.sin(safe) / safe)
    B = jnp.where(small, 0.5 - theta2 / 24.0,
                  (1.0 - jnp.cos(safe)) / jnp.maximum(theta2, 1e-24))
    z = jnp.zeros_like(wx)
    Kx = jnp.stack([jnp.stack([z, -wz, wy], -1),
                    jnp.stack([wz, z, -wx], -1),
                    jnp.stack([-wy, wx, z], -1)], -2)
    return (jnp.eye(3, dtype=w.dtype) + A[..., None, None] * Kx
            + B[..., None, None] * (Kx @ Kx))


def _build_param_table(params):
    """Fold per-image camera params into a [V, 12] table.

    Row layout per image v:
      [0:9]  C (row-major 3x3): rays_d = C @ [i, j, 1]
      [9:12] rays_o = cam_t + cam_dt
    This is O(N_VOCAB) host-side glue (the torch module's pytorch3d call /
    gathers are likewise outside the per-ray hot loop).
    """
    K = params["cam_K"].astype(jnp.float32)
    R = params["cam_R"].astype(jnp.float32)
    t = params["cam_t"].astype(jnp.float32)
    df = params["cam_df"].astype(jnp.float32)
    aa = params["cam_dR"].astype(jnp.float32)
    dt = params["cam_dt"].astype(jnp.float32)

    dR = _axis_angle_to_matrix(aa)                         # [V,3,3]
    M = jnp.einsum("vij,vjk->vik", dR, R)                  # [V,3,3]
    inv_fx = 1.0 / (K[:, 0, 0] + df[:, 0])
    inv_fy = 1.0 / (K[:, 1, 1] + df[:, 1])
    a0 = inv_fx
    b0 = -K[:, 0, 2] * inv_fx
    a1 = -inv_fy
    b1 = K[:, 1, 2] * inv_fy
    # dirs = [i*a0 + b0, j*a1 + b1, -1]  =>  rays_d = M @ dirs = C @ [i, j, 1]
    C0 = M[:, :, 0] * a0[:, None]                                    # coeff of i
    C1 = M[:, :, 1] * a1[:, None]                                    # coeff of j
    C2 = M[:, :, 0] * b0[:, None] + M[:, :, 1] * b1[:, None] - M[:, :, 2]
    C = jnp.stack([C0, C1, C2], axis=-1)                   # [V,3,3]
    o = t + dt                                             # [V,3]
    return jnp.concatenate([C.reshape(-1, 9), o], axis=-1).astype(jnp.float32)


def _choose_tiling(n_cols_needed, max_sub):
    # Tiny input: one tile whose block equals the full array dims.
    if n_cols_needed <= 8:
        return n_cols_needed, 1
    # Multi-tile: sublane-row count must be a multiple of 8.  Use large tiles
    # to amortize the ~0.35us per-step overhead, but keep >= 2 grid steps so a
    # v7x megacore can shard the "parallel" axis across its two TensorCores.
    sub = min(max_sub, -(-n_cols_needed // 2))
    sub = max(8, (sub // 8) * 8)
    grid = -(-n_cols_needed // sub)
    return sub, grid


def base_renderer_forward(pixel_coords, img_ids, params, bbox,
                          near=0.0, far=1.0,
                          rays_per_tile=DEFAULT_RAYS_PER_TILE,
                          lane_major=True):
    """JAX/Pallas equivalent of BaseRenderer.forward ray-setup path
    (use_viewdirs=True, bbox given, testing=False).

    Args:
      pixel_coords: [2, N_rays, 3] float.
      img_ids:      [N_rays] int.
      params: dict with cam_R [V,3,3], cam_t [V,3], cam_K [V,3,3],
              cam_dR [V,3], cam_dt [V,3], cam_df [V,2].
      bbox: [3, 2] HOST-side constant (numpy), per-axis [min, max].
      lane_major: if True (default), return the lane-dense [12, N_rays] layout
        straight from the kernel; otherwise transpose to [N_rays, 12].
    Returns:
      rays = [rays_o, rays_d, near, far, img_id, viewdirs] as [12, N] (default)
      or [N, 12].
    """
    ids = img_ids.reshape(-1).astype(jnp.int32)
    n = int(ids.shape[0])
    i = pixel_coords[0, :, 0].astype(jnp.float32)
    j = pixel_coords[0, :, 1].astype(jnp.float32)
    img_f = ids.astype(jnp.float32)

    tbl = _build_param_table(params)                       # [V, 12]
    n_vocab = int(tbl.shape[0])

    # Only the truly per-ray data goes through HBM: (3, N) = 12 B/ray.
    feats = jnp.stack([i, j, img_f], axis=0)

    # Lane-dense tiling: ray index -> (sublane-row, lane).
    n_cols_needed = -(-n // LANES)
    max_sub = max(1, rays_per_tile // LANES)
    sub, grid = _choose_tiling(n_cols_needed, max_sub)
    n_cols = grid * sub
    n_pad = n_cols * LANES
    if n_pad != n:
        feats = jnp.pad(feats, ((0, 0), (0, n_pad - n)), mode="edge")
    feats = feats.reshape(NUM_IN, n_cols, LANES)

    bbox_np = np.asarray(bbox, dtype=np.float64).reshape(3, 2)
    kernel = _make_ray_kernel(bbox_np, near, far, n_vocab)

    out = pl.pallas_call(
        kernel,
        out_shape=jax.ShapeDtypeStruct((NUM_OUT, n_cols, LANES), jnp.float32),
        grid=(grid,),
        in_specs=[
            pl.BlockSpec(memory_space=pltpu.MemorySpace.SMEM),   # [V,12] table
            pl.BlockSpec((NUM_IN, sub, LANES), lambda b: (0, b, 0)),
        ],
        out_specs=pl.BlockSpec((NUM_OUT, sub, LANES), lambda b: (0, b, 0)),
        compiler_params=pltpu.CompilerParams(
            dimension_semantics=("parallel",)),
    )(tbl, feats)

    out = out.reshape(NUM_OUT, n_pad)[:, :n]               # lane-dense [12, N]
    if lane_major:
        return out
    return out.T                                           # [N, 12]


# ----------------------------- pure-JAX reference ----------------------------

def reference_forward(pixel_coords, img_ids, params, bbox, near, far):
    ids = img_ids.reshape(-1).astype(jnp.int32)
    i = pixel_coords[0, :, 0].astype(jnp.float32)
    j = pixel_coords[0, :, 1].astype(jnp.float32)
    K = params["cam_K"][ids]
    R = params["cam_R"][ids]
    t = params["cam_t"][ids]
    df = params["cam_df"][ids]
    aa = params["cam_dR"][ids]
    dt = params["cam_dt"][ids]
    dirs = jnp.stack([(i - K[:, 0, 2]) / (K[:, 0, 0] + df[:, 0]),
                      -(j - K[:, 1, 2]) / (K[:, 1, 1] + df[:, 1]),
                      -jnp.ones_like(i)], -1)
    dR = _axis_angle_to_matrix(aa)
    rays_d = jnp.einsum("nij,njk,nk->ni", dR, R, dirs)
    rays_o = t + dt
    d_nz = jnp.where(jnp.abs(rays_d) < 1e-9, 1e-9, rays_d)
    bbox = jnp.asarray(bbox, jnp.float32)
    p1 = (bbox[None, :, 0] - rays_o) / d_nz
    p2 = (bbox[None, :, 1] - rays_o) / d_nz
    near_d = jnp.clip(jnp.minimum(p1, p2), 0.0, 100.0).max(axis=1)
    far_d = jnp.clip(jnp.maximum(p1, p2), 0.0, 100.0).min(axis=1)
    near_v = jnp.maximum(near_d, near)[:, None]
    far_v = jnp.clip(far_d, 0.0, far)[:, None]
    viewdirs = rays_d / jnp.linalg.norm(rays_d, axis=-1, keepdims=True)
    img_f = ids.astype(jnp.float32)[:, None]
    return jnp.concatenate([rays_o, rays_d, near_v, far_v, img_f, viewdirs], -1)


# --------------------------------- main --------------------------------------

if __name__ == "__main__":
    key = jax.random.PRNGKey(0)
    k_pix, k_ids = jax.random.split(key)

    n_rays = 300            # non-multiple of 128: exercises lane padding
    h = w = 16.0

    # Camera-correction parameters: small nonzero values to exercise the
    # axis-angle / df / dt folding (zeros in __init__, but they are trainable).
    v3 = jnp.arange(N_VOCAB * 3, dtype=jnp.float32).reshape(N_VOCAB, 3)
    v2 = jnp.arange(N_VOCAB * 2, dtype=jnp.float32).reshape(N_VOCAB, 2)
    cam_dR = 0.02 * (v3 - 7.0)
    cam_dt = 0.01 * (v3 - 6.0)
    cam_df = 0.10 * (v2 - 4.0)

    # init_cam_pose buffers, built deterministically in-script.
    v = jnp.arange(N_VOCAB, dtype=jnp.float32)
    az, ax = 0.1 * v, 0.05 * v
    cz, sz = jnp.cos(az), jnp.sin(az)
    cx_, sx_ = jnp.cos(ax), jnp.sin(ax)
    z0, o0 = jnp.zeros_like(v), jnp.ones_like(v)
    Rz = jnp.stack([jnp.stack([cz, -sz, z0], -1),
                    jnp.stack([sz, cz, z0], -1),
                    jnp.stack([z0, z0, o0], -1)], -2)
    Rx = jnp.stack([jnp.stack([o0, z0, z0], -1),
                    jnp.stack([z0, cx_, -sx_], -1),
                    jnp.stack([z0, sx_, cx_], -1)], -2)
    cam_R = Rz @ Rx                                              # [V,3,3]
    cam_t = jnp.stack([0.2 * v, -0.1 * v, 3.0 + 0.1 * v], -1)    # [V,3]
    focal = 20.0 + v
    cam_K = jnp.stack([jnp.stack([focal, z0, jnp.full_like(v, w / 2)], -1),
                       jnp.stack([z0, focal, jnp.full_like(v, h / 2)], -1),
                       jnp.stack([z0, z0, o0], -1)], -2)          # [V,3,3]

    params = dict(cam_R=cam_R, cam_t=cam_t, cam_K=cam_K,
                  cam_dR=cam_dR, cam_dt=cam_dt, cam_df=cam_df)

    pixel_coords = jax.random.uniform(k_pix, (2, n_rays, 3),
                                      minval=0.0, maxval=16.0, dtype=jnp.float32)
    img_ids = jax.random.randint(k_ids, (n_rays,), 0, N_VOCAB)
    bbox = np.array([[-1.0, 1.0], [-1.0, 1.0], [-1.0, 1.0]], np.float32)
    near, far = 0.5, 6.0

    rays_lm = base_renderer_forward(pixel_coords, img_ids, params, bbox,
                                    near=near, far=far)           # [12, N]
    rays_lm = jax.block_until_ready(rays_lm)
    assert rays_lm.shape == (12, n_rays), rays_lm.shape

    rays_ref = reference_forward(pixel_coords, img_ids, params, bbox, near, far)
    ref_lm = rays_ref.T                                            # [12, N]

    def max_err(a, b):
        return float(jnp.max(jnp.abs(a - b)))

    assert max_err(rays_lm[0:6], ref_lm[0:6]) < 5e-3, \
        max_err(rays_lm[0:6], ref_lm[0:6])          # rays_o / rays_d
    assert max_err(rays_lm[6:8], ref_lm[6:8]) < 5e-3, \
        max_err(rays_lm[6:8], ref_lm[6:8])          # near / far (exact recip)
    assert max_err(rays_lm[8:12], ref_lm[8:12]) < 5e-3, \
        max_err(rays_lm[8:12], ref_lm[8:12])        # img_id / viewdirs

    print("KERNEL_OK")
</pallas_src>

<mosaic_0001>
module attributes {stable_mosaic.version = 11 : i64} {
  func.func @ray_kernel(%arg0: i32, %arg1: memref<5x12xf32, #tpu.memory_space<smem>>, %arg2: memref<3x3x128xf32, #tpu.memory_space<vmem>>, %arg3: memref<12x3x128xf32, #tpu.memory_space<vmem>>) attributes {dimension_semantics = [#tpu.dimension_semantics<parallel>], iteration_bounds = array<i64: 1>, scalar_prefetch = 0 : i64, scratch_operands = 0 : i64, tpu.core_type = #tpu.core_type<tc>, window_params = [{transform_indices = @transform_0, window_bounds = array<i64: 5, 12>}, {transform_indices = @transform_1, window_bounds = array<i64: 3, 3, 128>}, {transform_indices = @transform_2, window_bounds = array<i64: 12, 3, 128>}]} {
    %c0 = arith.constant 0 : index
    %c0_0 = arith.constant 0 : index
    %c0_1 = arith.constant 0 : index
    %0 = vector.load %arg2[%c0, %c0_0, %c0_1] : memref<3x3x128xf32, #tpu.memory_space<vmem>>, vector<1x3x128xf32>
    %1 = vector.shape_cast %0 : vector<1x3x128xf32> to vector<3x128xf32>
    %c1 = arith.constant 1 : index
    %c0_2 = arith.constant 0 : index
    %c0_3 = arith.constant 0 : index
    %2 = vector.load %arg2[%c1, %c0_2, %c0_3] : memref<3x3x128xf32, #tpu.memory_space<vmem>>, vector<1x3x128xf32>
    %3 = vector.shape_cast %2 : vector<1x3x128xf32> to vector<3x128xf32>
    %c2 = arith.constant 2 : index
    %c0_4 = arith.constant 0 : index
    %c0_5 = arith.constant 0 : index
    %4 = vector.load %arg2[%c2, %c0_4, %c0_5] : memref<3x3x128xf32, #tpu.memory_space<vmem>>, vector<1x3x128xf32>
    %5 = vector.shape_cast %4 : vector<1x3x128xf32> to vector<3x128xf32>
    %cst = arith.constant 0.000000e+00 : f32
    %6 = vector.broadcast %cst : f32 to vector<3x128xf32>
    %7 = arith.cmpf oeq, %5, %6 : vector<3x128xf32>
    %cst_6 = arith.constant 1.000000e+00 : f32
    %8 = vector.broadcast %cst_6 : f32 to vector<3x128xf32>
    %9 = arith.cmpf oeq, %5, %8 : vector<3x128xf32>
    %cst_7 = arith.constant 2.000000e+00 : f32
    %10 = vector.broadcast %cst_7 : f32 to vector<3x128xf32>
    %11 = arith.cmpf oeq, %5, %10 : vector<3x128xf32>
    %cst_8 = arith.constant 3.000000e+00 : f32
    %12 = vector.broadcast %cst_8 : f32 to vector<3x128xf32>
    %13 = arith.cmpf oeq, %5, %12 : vector<3x128xf32>
    %c3 = arith.constant 3 : index
    %c0_9 = arith.constant 0 : index
    %14 = memref.load %arg1[%c3, %c0_9] : memref<5x12xf32, #tpu.memory_space<smem>>
    %c4 = arith.constant 4 : index
    %c0_10 = arith.constant 0 : index
    %15 = memref.load %arg1[%c4, %c0_10] : memref<5x12xf32, #tpu.memory_space<smem>>
    %16 = vector.broadcast %14 : f32 to vector<3x128xf32>
    %17 = vector.broadcast %15 : f32 to vector<3x128xf32>
    %18 = arith.select %13, %16, %17 : vector<3x128xi1>, vector<3x128xf32>
    %c2_11 = arith.constant 2 : index
    %c0_12 = arith.constant 0 : index
    %19 = memref.load %arg1[%c2_11, %c0_12] : memref<5x12xf32, #tpu.memory_space<smem>>
    %20 = vector.broadcast %19 : f32 to vector<3x128xf32>
    %21 = arith.select %11, %20, %18 : vector<3x128xi1>, vector<3x128xf32>
    %c1_13 = arith.constant 1 : index
    %c0_14 = arith.constant 0 : index
    %22 = memref.load %arg1[%c1_13, %c0_14] : memref<5x12xf32, #tpu.memory_space<smem>>
    %23 = vector.broadcast %22 : f32 to vector<3x128xf32>
    %24 = arith.select %9, %23, %21 : vector<3x128xi1>, vector<3x128xf32>
    %c0_15 = arith.constant 0 : index
    %c0_16 = arith.constant 0 : index
    %25 = memref.load %arg1[%c0_15, %c0_16] : memref<5x12xf32, #tpu.memory_space<smem>>
    %26 = vector.broadcast %25 : f32 to vector<3x128xf32>
    %27 = arith.select %7, %26, %24 : vector<3x128xi1>, vector<3x128xf32>
    %c3_17 = arith.constant 3 : index
    %c1_18 = arith.constant 1 : index
    %28 = memref.load %arg1[%c3_17, %c1_18] : memref<5x12xf32, #tpu.memory_space<smem>>
    %c4_19 = arith.constant 4 : index
    %c1_20 = arith.constant 1 : index
    %29 = memref.load %arg1[%c4_19, %c1_20] : memref<5x12xf32, #tpu.memory_space<smem>>
    %30 = vector.broadcast %28 : f32 to vector<3x128xf32>
    %31 = vector.broadcast %29 : f32 to vector<3x128xf32>
    %32 = arith.select %13, %30, %31 : vector<3x128xi1>, vector<3x128xf32>
    %c2_21 = arith.constant 2 : index
    %c1_22 = arith.constant 1 : index
    %33 = memref.load %arg1[%c2_21, %c1_22] : memref<5x12xf32, #tpu.memory_space<smem>>
    %34 = vector.broadcast %33 : f32 to vector<3x128xf32>
    %35 = arith.select %11, %34, %32 : vector<3x128xi1>, vector<3x128xf32>
    %c1_23 = arith.constant 1 : index
    %c1_24 = arith.constant 1 : index
    %36 = memref.load %arg1[%c1_23, %c1_24] : memref<5x12xf32, #tpu.memory_space<smem>>
    %37 = vector.broadcast %36 : f32 to vector<3x128xf32>
    %38 = arith.select %9, %37, %35 : vector<3x128xi1>, vector<3x128xf32>
    %c0_25 = arith.constant 0 : index
    %c1_26 = arith.constant 1 : index
    %39 = memref.load %arg1[%c0_25, %c1_26] : memref<5x12xf32, #tpu.memory_space<smem>>
    %40 = vector.broadcast %39 : f32 to vector<3x128xf32>
    %41 = arith.select %7, %40, %38 : vector<3x128xi1>, vector<3x128xf32>
    %c3_27 = arith.constant 3 : index
    %c2_28 = arith.constant 2 : index
    %42 = memref.load %arg1[%c3_27, %c2_28] : memref<5x12xf32, #tpu.memory_space<smem>>
    %c4_29 = arith.constant 4 : index
    %c2_30 = arith.constant 2 : index
    %43 = memref.load %arg1[%c4_29, %c2_30] : memref<5x12xf32, #tpu.memory_space<smem>>
    %44 = vector.broadcast %42 : f32 to vector<3x128xf32>
    %45 = vector.broadcast %43 : f32 to vector<3x128xf32>
    %46 = arith.select %13, %44, %45 : vector<3x128xi1>, vector<3x128xf32>
    %c2_31 = arith.constant 2 : index
    %c2_32 = arith.constant 2 : index
    %47 = memref.load %arg1[%c2_31, %c2_32] : memref<5x12xf32, #tpu.memory_space<smem>>
    %48 = vector.broadcast %47 : f32 to vector<3x128xf32>
    %49 = arith.select %11, %48, %46 : vector<3x128xi1>, vector<3x128xf32>
    %c1_33 = arith.constant 1 : index
    %c2_34 = arith.constant 2 : index
    %50 = memref.load %arg1[%c1_33, %c2_34] : memref<5x12xf32, #tpu.memory_space<smem>>
    %51 = vector.broadcast %50 : f32 to vector<3x128xf32>
    %52 = arith.select %9, %51, %49 : vector<3x128xi1>, vector<3x128xf32>
    %c0_35 = arith.constant 0 : index
    %c2_36 = arith.constant 2 : index
    %53 = memref.load %arg1[%c0_35, %c2_36] : memref<5x12xf32, #tpu.memory_space<smem>>
    %54 = vector.broadcast %53 : f32 to vector<3x128xf32>
    %55 = arith.select %7, %54, %52 : vector<3x128xi1>, vector<3x128xf32>
    %56 = arith.mulf %27, %1 : vector<3x128xf32>
    %57 = arith.mulf %41, %3 : vector<3x128xf32>
    %58 = arith.addf %56, %57 : vector<3x128xf32>
    %59 = arith.addf %58, %55 : vector<3x128xf32>
    %c3_37 = arith.constant 3 : index
    %c3_38 = arith.constant 3 : index
    %60 = memref.load %arg1[%c3_37, %c3_38] : memref<5x12xf32, #tpu.memory_space<smem>>
    %c4_39 = arith.constant 4 : index
    %c3_40 = arith.constant 3 : index
    %61 = memref.load %arg1[%c4_39, %c3_40] : memref<5x12xf32, #tpu.memory_space<smem>>
    %62 = vector.broadcast %60 : f32 to vector<3x128xf32>
    %63 = vector.broadcast %61 : f32 to vector<3x128xf32>
    %64 = arith.select %13, %62, %63 : vector<3x128xi1>, vector<3x128xf32>
    %c2_41 = arith.constant 2 : index
    %c3_42 = arith.constant 3 : index
    %65 = memref.load %arg1[%c2_41, %c3_42] : memref<5x12xf32, #tpu.memory_space<smem>>
    %66 = vector.broadcast %65 : f32 to vector<3x128xf32>
    %67 = arith.select %11, %66, %64 : vector<3x128xi1>, vector<3x128xf32>
    %c1_43 = arith.constant 1 : index
    %c3_44 = arith.constant 3 : index
    %68 = memref.load %arg1[%c1_43, %c3_44] : memref<5x12xf32, #tpu.memory_space<smem>>
    %69 = vector.broadcast %68 : f32 to vector<3x128xf32>
    %70 = arith.select %9, %69, %67 : vector<3x128xi1>, vector<3x128xf32>
    %c0_45 = arith.constant 0 : index
    %c3_46 = arith.constant 3 : index
    %71 = memref.load %arg1[%c0_45, %c3_46] : memref<5x12xf32, #tpu.memory_space<smem>>
    %72 = vector.broadcast %71 : f32 to vector<3x128xf32>
    %73 = arith.select %7, %72, %70 : vector<3x128xi1>, vector<3x128xf32>
    %c3_47 = arith.constant 3 : index
    %c4_48 = arith.constant 4 : index
    %74 = memref.load %arg1[%c3_47, %c4_48] : memref<5x12xf32, #tpu.memory_space<smem>>
    %c4_49 = arith.constant 4 : index
    %c4_50 = arith.constant 4 : index
    %75 = memref.load %arg1[%c4_49, %c4_50] : memref<5x12xf32, #tpu.memory_space<smem>>
    %76 = vector.broadcast %74 : f32 to vector<3x128xf32>
    %77 = vector.broadcast %75 : f32 to vector<3x128xf32>
    %78 = arith.select %13, %76, %77 : vector<3x128xi1>, vector<3x128xf32>
    %c2_51 = arith.constant 2 : index
    %c4_52 = arith.constant 4 : index
    %79 = memref.load %arg1[%c2_51, %c4_52] : memref<5x12xf32, #tpu.memory_space<smem>>
    %80 = vector.broadcast %79 : f32 to vector<3x128xf32>
    %81 = arith.select %11, %80, %78 : vector<3x128xi1>, vector<3x128xf32>
    %c1_53 = arith.constant 1 : index
    %c4_54 = arith.constant 4 : index
    %82 = memref.load %arg1[%c1_53, %c4_54] : memref<5x12xf32, #tpu.memory_space<smem>>
    %83 = vector.broadcast %82 : f32 to vector<3x128xf32>
    %84 = arith.select %9, %83, %81 : vector<3x128xi1>, vector<3x128xf32>
    %c0_55 = arith.constant 0 : index
    %c4_56 = arith.constant 4 : index
    %85 = memref.load %arg1[%c0_55, %c4_56] : memref<5x12xf32, #tpu.memory_space<smem>>
    %86 = vector.broadcast %85 : f32 to vector<3x128xf32>
    %87 = arith.select %7, %86, %84 : vector<3x128xi1>, vector<3x128xf32>
    %c3_57 = arith.constant 3 : index
    %c5 = arith.constant 5 : index
    %88 = memref.load %arg1[%c3_57, %c5] : memref<5x12xf32, #tpu.memory_space<smem>>
    %c4_58 = arith.constant 4 : index
    %c5_59 = arith.constant 5 : index
    %89 = memref.load %arg1[%c4_58, %c5_59] : memref<5x12xf32, #tpu.memory_space<smem>>
    %90 = vector.broadcast %88 : f32 to vector<3x128xf32>
    %91 = vector.broadcast %89 : f32 to vector<3x128xf32>
    %92 = arith.select %13, %90, %91 : vector<3x128xi1>, vector<3x128xf32>
    %c2_60 = arith.constant 2 : index
    %c5_61 = arith.constant 5 : index
    %93 = memref.load %arg1[%c2_60, %c5_61] : memref<5x12xf32, #tpu.memory_space<smem>>
    %94 = vector.broadcast %93 : f32 to vector<3x128xf32>
    %95 = arith.select %11, %94, %92 : vector<3x128xi1>, vector<3x128xf32>
    %c1_62 = arith.constant 1 : index
    %c5_63 = arith.constant 5 : index
    %96 = memref.load %arg1[%c1_62, %c5_63] : memref<5x12xf32, #tpu.memory_space<smem>>
    %97 = vector.broadcast %96 : f32 to vector<3x128xf32>
    %98 = arith.select %9, %97, %95 : vector<3x128xi1>, vector<3x128xf32>
    %c0_64 = arith.constant 0 : index
    %c5_65 = arith.constant 5 : index
    %99 = memref.load %arg1[%c0_64, %c5_65] : memref<5x12xf32, #tpu.memory_space<smem>>
    %100 = vector.broadcast %99 : f32 to vector<3x128xf32>
    %101 = arith.select %7, %100, %98 : vector<3x128xi1>, vector<3x128xf32>
    %102 = arith.mulf %73, %1 : vector<3x128xf32>
    %103 = arith.mulf %87, %3 : vector<3x128xf32>
    %104 = arith.addf %102, %103 : vector<3x128xf32>
    %105 = arith.addf %104, %101 : vector<3x128xf32>
    %c3_66 = arith.constant 3 : index
    %c6 = arith.constant 6 : index
    %106 = memref.load %arg1[%c3_66, %c6] : memref<5x12xf32, #tpu.memory_space<smem>>
    %c4_67 = arith.constant 4 : index
    %c6_68 = arith.constant 6 : index
    %107 = memref.load %arg1[%c4_67, %c6_68] : memref<5x12xf32, #tpu.memory_space<smem>>
    %108 = vector.broadcast %106 : f32 to vector<3x128xf32>
    %109 = vector.broadcast %107 : f32 to vector<3x128xf32>
    %110 = arith.select %13, %108, %109 : vector<3x128xi1>, vector<3x128xf32>
    %c2_69 = arith.constant 2 : index
    %c6_70 = arith.constant 6 : index
    %111 = memref.load %arg1[%c2_69, %c6_70] : memref<5x12xf32, #tpu.memory_space<smem>>
    %112 = vector.broadcast %111 : f32 to vector<3x128xf32>
    %113 = arith.select %11, %112, %110 : vector<3x128xi1>, vector<3x128xf32>
    %c1_71 = arith.constant 1 : index
    %c6_72 = arith.constant 6 : index
    %114 = memref.load %arg1[%c1_71, %c6_72] : memref<5x12xf32, #tpu.memory_space<smem>>
    %115 = vector.broadcast %114 : f32 to vector<3x128xf32>
    %116 = arith.select %9, %115, %113 : vector<3x128xi1>, vector<3x128xf32>
    %c0_73 = arith.constant 0 : index
    %c6_74 = arith.constant 6 : index
    %117 = memref.load %arg1[%c0_73, %c6_74] : memref<5x12xf32, #tpu.memory_space<smem>>
    %118 = vector.broadcast %117 : f32 to vector<3x128xf32>
    %119 = arith.select %7, %118, %116 : vector<3x128xi1>, vector<3x128xf32>
    %c3_75 = arith.constant 3 : index
    %c7 = arith.constant 7 : index
    %120 = memref.load %arg1[%c3_75, %c7] : memref<5x12xf32, #tpu.memory_space<smem>>
    %c4_76 = arith.constant 4 : index
    %c7_77 = arith.constant 7 : index
    %121 = memref.load %arg1[%c4_76, %c7_77] : memref<5x12xf32, #tpu.memory_space<smem>>
    %122 = vector.broadcast %120 : f32 to vector<3x128xf32>
    %123 = vector.broadcast %121 : f32 to vector<3x128xf32>
    %124 = arith.select %13, %122, %123 : vector<3x128xi1>, vector<3x128xf32>
    %c2_78 = arith.constant 2 : index
    %c7_79 = arith.constant 7 : index
    %125 = memref.load %arg1[%c2_78, %c7_79] : memref<5x12xf32, #tpu.memory_space<smem>>
    %126 = vector.broadcast %125 : f32 to vector<3x128xf32>
    %127 = arith.select %11, %126, %124 : vector<3x128xi1>, vector<3x128xf32>
    %c1_80 = arith.constant 1 : index
    %c7_81 = arith.constant 7 : index
    %128 = memref.load %arg1[%c1_80, %c7_81] : memref<5x12xf32, #tpu.memory_space<smem>>
    %129 = vector.broadcast %128 : f32 to vector<3x128xf32>
    %130 = arith.select %9, %129, %127 : vector<3x128xi1>, vector<3x128xf32>
    %c0_82 = arith.constant 0 : index
    %c7_83 = arith.constant 7 : index
    %131 = memref.load %arg1[%c0_82, %c7_83] : memref<5x12xf32, #tpu.memory_space<smem>>
    %132 = vector.broadcast %131 : f32 to vector<3x128xf32>
    %133 = arith.select %7, %132, %130 : vector<3x128xi1>, vector<3x128xf32>
    %c3_84 = arith.constant 3 : index
    %c8 = arith.constant 8 : index
    %134 = memref.load %arg1[%c3_84, %c8] : memref<5x12xf32, #tpu.memory_space<smem>>
    %c4_85 = arith.constant 4 : index
    %c8_86 = arith.constant 8 : index
    %135 = memref.load %arg1[%c4_85, %c8_86] : memref<5x12xf32, #tpu.memory_space<smem>>
    %136 = vector.broadcast %134 : f32 to vector<3x128xf32>
    %137 = vector.broadcast %135 : f32 to vector<3x128xf32>
    %138 = arith.select %13, %136, %137 : vector<3x128xi1>, vector<3x128xf32>
    %c2_87 = arith.constant 2 : index
    %c8_88 = arith.constant 8 : index
    %139 = memref.load %arg1[%c2_87, %c8_88] : memref<5x12xf32, #tpu.memory_space<smem>>
    %140 = vector.broadcast %139 : f32 to vector<3x128xf32>
    %141 = arith.select %11, %140, %138 : vector<3x128xi1>, vector<3x128xf32>
    %c1_89 = arith.constant 1 : index
    %c8_90 = arith.constant 8 : index
    %142 = memref.load %arg1[%c1_89, %c8_90] : memref<5x12xf32, #tpu.memory_space<smem>>
    %143 = vector.broadcast %142 : f32 to vector<3x128xf32>
    %144 = arith.select %9, %143, %141 : vector<3x128xi1>, vector<3x128xf32>
    %c0_91 = arith.constant 0 : index
    %c8_92 = arith.constant 8 : index
    %145 = memref.load %arg1[%c0_91, %c8_92] : memref<5x12xf32, #tpu.memory_space<smem>>
    %146 = vector.broadcast %145 : f32 to vector<3x128xf32>
    %147 = arith.select %7, %146, %144 : vector<3x128xi1>, vector<3x128xf32>
    %148 = arith.mulf %119, %1 : vector<3x128xf32>
    %149 = arith.mulf %133, %3 : vector<3x128xf32>
    %150 = arith.addf %148, %149 : vector<3x128xf32>
    %151 = arith.addf %150, %147 : vector<3x128xf32>
    %c3_93 = arith.constant 3 : index
    %c9 = arith.constant 9 : index
    %152 = memref.load %arg1[%c3_93, %c9] : memref<5x12xf32, #tpu.memory_space<smem>>
    %c4_94 = arith.constant 4 : index
    %c9_95 = arith.constant 9 : index
    %153 = memref.load %arg1[%c4_94, %c9_95] : memref<5x12xf32, #tpu.memory_space<smem>>
    %154 = vector.broadcast %152 : f32 to vector<3x128xf32>
    %155 = vector.broadcast %153 : f32 to vector<3x128xf32>
    %156 = arith.select %13, %154, %155 : vector<3x128xi1>, vector<3x128xf32>
    %c2_96 = arith.constant 2 : index
    %c9_97 = arith.constant 9 : index
    %157 = memref.load %arg1[%c2_96, %c9_97] : memref<5x12xf32, #tpu.memory_space<smem>>
    %158 = vector.broadcast %157 : f32 to vector<3x128xf32>
    %159 = arith.select %11, %158, %156 : vector<3x128xi1>, vector<3x128xf32>
    %c1_98 = arith.constant 1 : index
    %c9_99 = arith.constant 9 : index
    %160 = memref.load %arg1[%c1_98, %c9_99] : memref<5x12xf32, #tpu.memory_space<smem>>
    %161 = vector.broadcast %160 : f32 to vector<3x128xf32>
    %162 = arith.select %9, %161, %159 : vector<3x128xi1>, vector<3x128xf32>
    %c0_100 = arith.constant 0 : index
    %c9_101 = arith.constant 9 : index
    %163 = memref.load %arg1[%c0_100, %c9_101] : memref<5x12xf32, #tpu.memory_space<smem>>
    %164 = vector.broadcast %163 : f32 to vector<3x128xf32>
    %165 = arith.select %7, %164, %162 : vector<3x128xi1>, vector<3x128xf32>
    %c3_102 = arith.constant 3 : index
    %c10 = arith.constant 10 : index
    %166 = memref.load %arg1[%c3_102, %c10] : memref<5x12xf32, #tpu.memory_space<smem>>
    %c4_103 = arith.constant 4 : index
    %c10_104 = arith.constant 10 : index
    %167 = memref.load %arg1[%c4_103, %c10_104] : memref<5x12xf32, #tpu.memory_space<smem>>
    %168 = vector.broadcast %166 : f32 to vector<3x128xf32>
    %169 = vector.broadcast %167 : f32 to vector<3x128xf32>
    %170 = arith.select %13, %168, %169 : vector<3x128xi1>, vector<3x128xf32>
    %c2_105 = arith.constant 2 : index
    %c10_106 = arith.constant 10 : index
    %171 = memref.load %arg1[%c2_105, %c10_106] : memref<5x12xf32, #tpu.memory_space<smem>>
    %172 = vector.broadcast %171 : f32 to vector<3x128xf32>
    %173 = arith.select %11, %172, %170 : vector<3x128xi1>, vector<3x128xf32>
    %c1_107 = arith.constant 1 : index
    %c10_108 = arith.constant 10 : index
    %174 = memref.load %arg1[%c1_107, %c10_108] : memref<5x12xf32, #tpu.memory_space<smem>>
    %175 = vector.broadcast %174 : f32 to vector<3x128xf32>
    %176 = arith.select %9, %175, %173 : vector<3x128xi1>, vector<3x128xf32>
    %c0_109 = arith.constant 0 : index
    %c10_110 = arith.constant 10 : index
    %177 = memref.load %arg1[%c0_109, %c10_110] : memref<5x12xf32, #tpu.memory_space<smem>>
    %178 = vector.broadcast %177 : f32 to vector<3x128xf32>
    %179 = arith.select %7, %178, %176 : vector<3x128xi1>, vector<3x128xf32>
    %c3_111 = arith.constant 3 : index
    %c11 = arith.constant 11 : index
    %180 = memref.load %arg1[%c3_111, %c11] : memref<5x12xf32, #tpu.memory_space<smem>>
    %c4_112 = arith.constant 4 : index
    %c11_113 = arith.constant 11 : index
    %181 = memref.load %arg1[%c4_112, %c11_113] : memref<5x12xf32, #tpu.memory_space<smem>>
    %182 = vector.broadcast %180 : f32 to vector<3x128xf32>
    %183 = vector.broadcast %181 : f32 to vector<3x128xf32>
    %184 = arith.select %13, %182, %183 : vector<3x128xi1>, vector<3x128xf32>
    %c2_114 = arith.constant 2 : index
    %c11_115 = arith.constant 11 : index
    %185 = memref.load %arg1[%c2_114, %c11_115] : memref<5x12xf32, #tpu.memory_space<smem>>
    %186 = vector.broadcast %185 : f32 to vector<3x128xf32>
    %187 = arith.select %11, %186, %184 : vector<3x128xi1>, vector<3x128xf32>
    %c1_116 = arith.constant 1 : index
    %c11_117 = arith.constant 11 : index
    %188 = memref.load %arg1[%c1_116, %c11_117] : memref<5x12xf32, #tpu.memory_space<smem>>
    %189 = vector.broadcast %188 : f32 to vector<3x128xf32>
    %190 = arith.select %9, %189, %187 : vector<3x128xi1>, vector<3x128xf32>
    %c0_118 = arith.constant 0 : index
    %c11_119 = arith.constant 11 : index
    %191 = memref.load %arg1[%c0_118, %c11_119] : memref<5x12xf32, #tpu.memory_space<smem>>
    %192 = vector.broadcast %191 : f32 to vector<3x128xf32>
    %193 = arith.select %7, %192, %190 : vector<3x128xi1>, vector<3x128xf32>
    %c0_120 = arith.constant 0 : index
    %c0_121 = arith.constant 0 : index
    %c0_122 = arith.constant 0 : index
    %194 = vector.load %arg3[%c0_120, %c0_121, %c0_122] : memref<12x3x128xf32, #tpu.memory_space<vmem>>, vector<1x3x128xf32>
    %195 = vector.shape_cast %194 : vector<1x3x128xf32> to vector<3x128xf32>
    %196 = vector.shape_cast %165 : vector<3x128xf32> to vector<1x3x128xf32>
    tpu.vector_store %arg3[%c0_120, %c0_121, %c0_122], %196 {strides = array<i32>} : memref<12x3x128xf32, #tpu.memory_space<vmem>>, vector<1x3x128xf32>,
    %c3_123 = arith.constant 3 : index
    %c0_124 = arith.constant 0 : index
    %c0_125 = arith.constant 0 : index
    %197 = vector.load %arg3[%c3_123, %c0_124, %c0_125] : memref<12x3x128xf32, #tpu.memory_space<vmem>>, vector<1x3x128xf32>
    %198 = vector.shape_cast %197 : vector<1x3x128xf32> to vector<3x128xf32>
    %199 = vector.shape_cast %59 : vector<3x128xf32> to vector<1x3x128xf32>
    tpu.vector_store %arg3[%c3_123, %c0_124, %c0_125], %199 {strides = array<i32>} : memref<12x3x128xf32, #tpu.memory_space<vmem>>, vector<1x3x128xf32>,
    %c1_126 = arith.constant 1 : index
    %c0_127 = arith.constant 0 : index
    %c0_128 = arith.constant 0 : index
    %200 = vector.load %arg3[%c1_126, %c0_127, %c0_128] : memref<12x3x128xf32, #tpu.memory_space<vmem>>, vector<1x3x128xf32>
    %201 = vector.shape_cast %200 : vector<1x3x128xf32> to vector<3x128xf32>
    %202 = vector.shape_cast %179 : vector<3x128xf32> to vector<1x3x128xf32>
    tpu.vector_store %arg3[%c1_126, %c0_127, %c0_128], %202 {strides = array<i32>} : memref<12x3x128xf32, #tpu.memory_space<vmem>>, vector<1x3x128xf32>,
    %c4_129 = arith.constant 4 : index
    %c0_130 = arith.constant 0 : index
    %c0_131 = arith.constant 0 : index
    %203 = vector.load %arg3[%c4_129, %c0_130, %c0_131] : memref<12x3x128xf32, #tpu.memory_space<vmem>>, vector<1x3x128xf32>
    %204 = vector.shape_cast %203 : vector<1x3x128xf32> to vector<3x128xf32>
    %205 = vector.shape_cast %105 : vector<3x128xf32> to vector<1x3x128xf32>
    tpu.vector_store %arg3[%c4_129, %c0_130, %c0_131], %205 {strides = array<i32>} : memref<12x3x128xf32, #tpu.memory_space<vmem>>, vector<1x3x128xf32>,
    %c2_132 = arith.constant 2 : index
    %c0_133 = arith.constant 0 : index
    %c0_134 = arith.constant 0 : index
    %206 = vector.load %arg3[%c2_132, %c0_133, %c0_134] : memref<12x3x128xf32, #tpu.memory_space<vmem>>, vector<1x3x128xf32>
    %207 = vector.shape_cast %206 : vector<1x3x128xf32> to vector<3x128xf32>
    %208 = vector.shape_cast %193 : vector<3x128xf32> to vector<1x3x128xf32>
    tpu.vector_store %arg3[%c2_132, %c0_133, %c0_134], %208 {strides = array<i32>} : memref<12x3x128xf32, #tpu.memory_space<vmem>>, vector<1x3x128xf32>,
    %c5_135 = arith.constant 5 : index
    %c0_136 = arith.constant 0 : index
    %c0_137 = arith.constant 0 : index
    %209 = vector.load %arg3[%c5_135, %c0_136, %c0_137] : memref<12x3x128xf32, #tpu.memory_space<vmem>>, vector<1x3x128xf32>
    %210 = vector.shape_cast %209 : vector<1x3x128xf32> to vector<3x128xf32>
    %211 = vector.shape_cast %151 : vector<3x128xf32> to vector<1x3x128xf32>
    tpu.vector_store %arg3[%c5_135, %c0_136, %c0_137], %211 {strides = array<i32>} : memref<12x3x128xf32, #tpu.memory_space<vmem>>, vector<1x3x128xf32>,
    %c8_138 = arith.constant 8 : index
    %c0_139 = arith.constant 0 : index
    %c0_140 = arith.constant 0 : index
    %212 = vector.load %arg3[%c8_138, %c0_139, %c0_140] : memref<12x3x128xf32, #tpu.memory_space<vmem>>, vector<1x3x128xf32>
    %213 = vector.shape_cast %212 : vector<1x3x128xf32> to vector<3x128xf32>
    %214 = vector.shape_cast %5 : vector<3x128xf32> to vector<1x3x128xf32>
    tpu.vector_store %arg3[%c8_138, %c0_139, %c0_140], %214 {strides = array<i32>} : memref<12x3x128xf32, #tpu.memory_space<vmem>>, vector<1x3x128xf32>,
    %215 = math.absf %59 : vector<3x128xf32>
    %cst_141 = arith.constant 9.99999971E-10 : f32
    %216 = vector.broadcast %cst_141 : f32 to vector<3x128xf32>
    %217 = arith.cmpf olt, %215, %216 : vector<3x128xf32>
    %cst_142 = arith.constant 9.99999971E-10 : f32
    %218 = vector.broadcast %cst_142 : f32 to vector<3x128xf32>
    %219 = arith.select %217, %218, %59 : vector<3x128xi1>, vector<3x128xf32>
    %220 = tpu.reciprocal %219 : vector<3x128xf32> -> vector<3x128xf32>
    %cst_143 = arith.constant -1.000000e+00 : f32
    %221 = vector.broadcast %cst_143 : f32 to vector<3x128xf32>
    %222 = arith.subf %221, %165 : vector<3x128xf32>
    %223 = arith.mulf %222, %220 : vector<3x128xf32>
    %cst_144 = arith.constant 1.000000e+00 : f32
    %224 = vector.broadcast %cst_144 : f32 to vector<3x128xf32>
    %225 = arith.subf %224, %165 : vector<3x128xf32>
    %226 = arith.mulf %225, %220 : vector<3x128xf32>
    %227 = arith.minimumf %223, %226 : vector<3x128xf32>
    %cst_145 = arith.constant 0.000000e+00 : f32
    %cst_146 = arith.constant 1.000000e+02 : f32
    %228 = vector.broadcast %cst_145 : f32 to vector<3x128xf32>
    %229 = arith.maximumf %228, %227 : vector<3x128xf32>
    %230 = vector.broadcast %cst_146 : f32 to vector<3x128xf32>
    %231 = arith.minimumf %230, %229 : vector<3x128xf32>
    %232 = arith.maximumf %223, %226 : vector<3x128xf32>
    %cst_147 = arith.constant 0.000000e+00 : f32
    %cst_148 = arith.constant 1.000000e+02 : f32
    %233 = vector.broadcast %cst_147 : f32 to vector<3x128xf32>
    %234 = arith.maximumf %233, %232 : vector<3x128xf32>
    %235 = vector.broadcast %cst_148 : f32 to vector<3x128xf32>
    %236 = arith.minimumf %235, %234 : vector<3x128xf32>
    %237 = math.absf %105 : vector<3x128xf32>
    %cst_149 = arith.constant 9.99999971E-10 : f32
    %238 = vector.broadcast %cst_149 : f32 to vector<3x128xf32>
    %239 = arith.cmpf olt, %237, %238 : vector<3x128xf32>
    %cst_150 = arith.constant 9.99999971E-10 : f32
    %240 = vector.broadcast %cst_150 : f32 to vector<3x128xf32>
    %241 = arith.select %239, %240, %105 : vector<3x128xi1>, vector<3x128xf32>
    %242 = tpu.reciprocal %241 : vector<3x128xf32> -> vector<3x128xf32>
    %cst_151 = arith.constant -1.000000e+00 : f32
    %243 = vector.broadcast %cst_151 : f32 to vector<3x128xf32>
    %244 = arith.subf %243, %179 : vector<3x128xf32>
    %245 = arith.mulf %244, %242 : vector<3x128xf32>
    %cst_152 = arith.constant 1.000000e+00 : f32
    %246 = vector.broadcast %cst_152 : f32 to vector<3x128xf32>
    %247 = arith.subf %246, %179 : vector<3x128xf32>
    %248 = arith.mulf %247, %242 : vector<3x128xf32>
    %249 = arith.minimumf %245, %248 : vector<3x128xf32>
    %cst_153 = arith.constant 0.000000e+00 : f32
    %cst_154 = arith.constant 1.000000e+02 : f32
    %250 = vector.broadcast %cst_153 : f32 to vector<3x128xf32>
    %251 = arith.maximumf %250, %249 : vector<3x128xf32>
    %252 = vector.broadcast %cst_154 : f32 to vector<3x128xf32>
    %253 = arith.minimumf %252, %251 : vector<3x128xf32>
    %254 = arith.maximumf %245, %248 : vector<3x128xf32>
    %cst_155 = arith.constant 0.000000e+00 : f32
    %cst_156 = arith.constant 1.000000e+02 : f32
    %255 = vector.broadcast %cst_155 : f32 to vector<3x128xf32>
    %256 = arith.maximumf %255, %254 : vector<3x128xf32>
    %257 = vector.broadcast %cst_156 : f32 to vector<3x128xf32>
    %258 = arith.minimumf %257, %256 : vector<3x128xf32>
    %259 = arith.maximumf %231, %253 : vector<3x128xf32>
    %260 = arith.minimumf %236, %258 : vector<3x128xf32>
    %261 = math.absf %151 : vector<3x128xf32>
    %cst_157 = arith.constant 9.99999971E-10 : f32
    %262 = vector.broadcast %cst_157 : f32 to vector<3x128xf32>
    %263 = arith.cmpf olt, %261, %262 : vector<3x128xf32>
    %cst_158 = arith.constant 9.99999971E-10 : f32
    %264 = vector.broadcast %cst_158 : f32 to vector<3x128xf32>
    %265 = arith.select %263, %264, %151 : vector<3x128xi1>, vector<3x128xf32>
    %266 = tpu.reciprocal %265 : vector<3x128xf32> -> vector<3x128xf32>
    %cst_159 = arith.constant -1.000000e+00 : f32
    %267 = vector.broadcast %cst_159 : f32 to vector<3x128xf32>
    %268 = arith.subf %267, %193 : vector<3x128xf32>
    %269 = arith.mulf %268, %266 : vector<3x128xf32>
    %cst_160 = arith.constant 1.000000e+00 : f32
    %270 = vector.broadcast %cst_160 : f32 to vector<3x128xf32>
    %271 = arith.subf %270, %193 : vector<3x128xf32>
    %272 = arith.mulf %271, %266 : vector<3x128xf32>
    %273 = arith.minimumf %269, %272 : vector<3x128xf32>
    %cst_161 = arith.constant 0.000000e+00 : f32
    %cst_162 = arith.constant 1.000000e+02 : f32
    %274 = vector.broadcast %cst_161 : f32 to vector<3x128xf32>
    %275 = arith.maximumf %274, %273 : vector<3x128xf32>
    %276 = vector.broadcast %cst_162 : f32 to vector<3x128xf32>
    %277 = arith.minimumf %276, %275 : vector<3x128xf32>
    %278 = arith.maximumf %269, %272 : vector<3x128xf32>
    %cst_163 = arith.constant 0.000000e+00 : f32
    %cst_164 = arith.constant 1.000000e+02 : f32
    %279 = vector.broadcast %cst_163 : f32 to vector<3x128xf32>
    %280 = arith.maximumf %279, %278 : vector<3x128xf32>
    %281 = vector.broadcast %cst_164 : f32 to vector<3x128xf32>
    %282 = arith.minimumf %281, %280 : vector<3x128xf32>
    %283 = arith.maximumf %259, %277 : vector<3x128xf32>
    %284 = arith.minimumf %260, %282 : vector<3x128xf32>
    %cst_165 = arith.constant 5.000000e-01 : f32
    %285 = vector.broadcast %cst_165 : f32 to vector<3x128xf32>
    %286 = arith.maximumf %283, %285 : vector<3x128xf32>
    %c6_166 = arith.constant 6 : index
    %c0_167 = arith.constant 0 : index
    %c0_168 = arith.constant 0 : index
    %287 = vector.load %arg3[%c6_166, %c0_167, %c0_168] : memref<12x3x128xf32, #tpu.memory_space<vmem>>, vector<1x3x128xf32>
    %288 = vector.shape_cast %287 : vector<1x3x128xf32> to vector<3x128xf32>
    %289 = vector.shape_cast %286 : vector<3x128xf32> to vector<1x3x128xf32>
    tpu.vector_store %arg3[%c6_166, %c0_167, %c0_168], %289 {strides = array<i32>} : memref<12x3x128xf32, #tpu.memory_space<vmem>>, vector<1x3x128xf32>,
    %cst_169 = arith.constant 0.000000e+00 : f32
    %cst_170 = arith.constant 6.000000e+00 : f32
    %290 = vector.broadcast %cst_169 : f32 to vector<3x128xf32>
    %291 = arith.maximumf %290, %284 : vector<3x128xf32>
    %292 = vector.broadcast %cst_170 : f32 to vector<3x128xf32>
    %293 = arith.minimumf %292, %291 : vector<3x128xf32>
    %c7_171 = arith.constant 7 : index
    %c0_172 = arith.constant 0 : index
    %c0_173 = arith.constant 0 : index
    %294 = vector.load %arg3[%c7_171, %c0_172, %c0_173] : memref<12x3x128xf32, #tpu.memory_space<vmem>>, vector<1x3x128xf32>
    %295 = vector.shape_cast %294 : vector<1x3x128xf32> to vector<3x128xf32>
    %296 = vector.shape_cast %293 : vector<3x128xf32> to vector<1x3x128xf32>
    tpu.vector_store %arg3[%c7_171, %c0_172, %c0_173], %296 {strides = array<i32>} : memref<12x3x128xf32, #tpu.memory_space<vmem>>, vector<1x3x128xf32>,
    %297 = arith.mulf %59, %59 : vector<3x128xf32>
    %298 = arith.mulf %105, %105 : vector<3x128xf32>
    %299 = arith.addf %297, %298 : vector<3x128xf32>
    %300 = arith.mulf %151, %151 : vector<3x128xf32>
    %301 = arith.addf %299, %300 : vector<3x128xf32>
    %302 = math.rsqrt %301 : vector<3x128xf32>
    %303 = arith.mulf %59, %302 : vector<3x128xf32>
    %c9_174 = arith.constant 9 : index
    %c0_175 = arith.constant 0 : index
    %c0_176 = arith.constant 0 : index
    %304 = vector.load %arg3[%c9_174, %c0_175, %c0_176] : memref<12x3x128xf32, #tpu.memory_space<vmem>>, vector<1x3x128xf32>
    %305 = vector.shape_cast %304 : vector<1x3x128xf32> to vector<3x128xf32>
    %306 = vector.shape_cast %303 : vector<3x128xf32> to vector<1x3x128xf32>
    tpu.vector_store %arg3[%c9_174, %c0_175, %c0_176], %306 {strides = array<i32>} : memref<12x3x128xf32, #tpu.memory_space<vmem>>, vector<1x3x128xf32>,
    %307 = arith.mulf %105, %302 : vector<3x128xf32>
    %c10_177 = arith.constant 10 : index
    %c0_178 = arith.constant 0 : index
    %c0_179 = arith.constant 0 : index
    %308 = vector.load %arg3[%c10_177, %c0_178, %c0_179] : memref<12x3x128xf32, #tpu.memory_space<vmem>>, vector<1x3x128xf32>
    %309 = vector.shape_cast %308 : vector<1x3x128xf32> to vector<3x128xf32>
    %310 = vector.shape_cast %307 : vector<3x128xf32> to vector<1x3x128xf32>
    tpu.vector_store %arg3[%c10_177, %c0_178, %c0_179], %310 {strides = array<i32>} : memref<12x3x128xf32, #tpu.memory_space<vmem>>, vector<1x3x128xf32>,
    %311 = arith.mulf %151, %302 : vector<3x128xf32>
    %c11_180 = arith.constant 11 : index
    %c0_181 = arith.constant 0 : index
    %c0_182 = arith.constant 0 : index
    %312 = vector.load %arg3[%c11_180, %c0_181, %c0_182] : memref<12x3x128xf32, #tpu.memory_space<vmem>>, vector<1x3x128xf32>
    %313 = vector.shape_cast %312 : vector<1x3x128xf32> to vector<3x128xf32>
    %314 = vector.shape_cast %311 : vector<3x128xf32> to vector<1x3x128xf32>
    tpu.vector_store %arg3[%c11_180, %c0_181, %c0_182], %314 {strides = array<i32>} : memref<12x3x128xf32, #tpu.memory_space<vmem>>, vector<1x3x128xf32>,
    return
  }
  func.func @transform_0(%arg0: i32) -> (i32, i32) {
    %c0_i32 = arith.constant 0 : i32
    %c0_i32_0 = arith.constant 0 : i32
    %c0_i32_1 = arith.constant 0 : i32
    return %c0_i32, %c0_i32_0 : i32, i32
  }
  func.func @transform_1(%arg0: i32) -> (i32, i32, i32) {
    %c0_i32 = arith.constant 0 : i32
    %c0_i32_0 = arith.constant 0 : i32
    %c0_i32_1 = arith.constant 0 : i32
    return %c0_i32, %arg0, %c0_i32_0 : i32, i32, i32
  }
  func.func @transform_2(%arg0: i32) -> (i32, i32, i32) {
    %c0_i32 = arith.constant 0 : i32
    %c0_i32_0 = arith.constant 0 : i32
    %c0_i32_1 = arith.constant 0 : i32
    return %c0_i32, %arg0, %c0_i32_0 : i32, i32, i32
  }
}

</mosaic_0001>

<bundles_post_ra>
// kernel: tpu_custom_call.1
= control target key start
LH: loop header
LB: loop body
LE: loop exit
PB: predicated region body
PF: predicated region fallthrough
CT: control target
= control target key end

     0   :  { %7 = vsyncpa [#allocation5], 0  ;;  %s642_s0 = inlined_call_operand.hbm [shape: f32[5,12], index: 0, kind: input, shape index: {}]   ;;  %s643_s1 = inlined_call_operand.hbm [shape: f32[3,3,128], index: 1, kind: input, shape index: {}]   ;;  %s644_s2 = inlined_call_operand.hbm [shape: f32[12,3,128], index: 2, kind: output, shape index: {}]  }
   0x1   :  { %8 = vsyncpa [#allocation3], 0 }
   0x2   :  { %9 = vsyncpa [#allocation4], 0  ;;  %s451_s9 = smov [#allocation2]   ;;  %s452_s12 = smov [#allocation6]  }
   0x3   :  { %17 = dma.hbm_to_smem %s642_s0, 128, %s451_s9, [#allocation5]  }
   0x4   :  { %s23_s13 = sshll.u32 %s452_s12, 4  ;;  %s24_s13 = int_to_ptr.vmem [resolvable:$true] %s23_s13 }
   0x5   :  { %s413_s14 = scalar_lea.vmem %s24_s13, 192  ;;  %p418_p1 = scmp.lt.s32.totalorder %s24_s13, %s24_s13 }
   0x6   :  { %p414_p0 = scmp.ne.s32.totalorder %s24_s13, %s413_s14  ;;  %p419_p2 = scmp.lt.s32.totalorder %s413_s14, %s413_s14 }
   0x8   :  { %p420_p3 = por %p419_p2, %p418_p1 }
   0xa   :  { %p421_p4 = pnand %p420_p3, %p414_p0 }
   0xc   :  { %424 = shalt.err (!%p421_p4)
}
   0xd   :  { %s453_s15 = smov 64   ;;  %s454_s16 = smov 4  }
   0xe   :  { %29 = dma.hbm_to_vmem [thread:$0]  %s643_s1, 192, %s24_s13, [#allocation3], %s453_s15, %s453_s15, %s454_s16  }
   0xf   :  { %445 = dma.done.wait [#allocation5], 128  }
  0x10   :  { %446 = vsyncadd [#allocation5], 4294967168 }
  0x11   :  { %447 = dma.done.wait [#allocation3], 192  }
  0x12   :  { %448 = vsyncadd [#allocation3], 4294967104 }
  0x13   :  { %36 = sfence }
  0x14   :  { %v480_v0 = vld [vmem:[#allocation6 + $0x8] sm:$0x7]  ;;  %s325_s0 = sld [smem:[#allocation2 + $0x180]]  ;;  %v493_v10 = vld [vmem:[#allocation6] sm:$0x7] }
  0x15   :  { %238 = vst [vmem:[#allocation7 + $0x20] sm:$0x7] %v480_v0  ;;  %s326_s19 = sld [smem:[#allocation2 + $0x200]]  ;;  %vm45_vm0 = vcmp.eq.f32.partialorder %v480_v0, 3.0  ;;  %vm44_vm1 = vcmp.eq.f32.partialorder %v480_v0, 2.0  ;;  %vm43_vm2 = vcmp.eq.f32.partialorder %v480_v0, 1.0 }
  0x16   :  { %s327_s20 = sld [smem:[#allocation2 + $0x100]]  ;;  %vm42_vm3 = vcmp.eq.f32.partialorder %v480_v0, 0.0  ;;  %v499_v15 = vld [vmem:[#allocation6 + $0x4] sm:$0x7] }
  0x17   :  { %s328_s21 = sld [smem:[#allocation2 + $0x80]] }
  0x18   :  { %s57_s22 = sld [smem:[#allocation2]] }
  0x19   :  { %s329_s23 = sld [smem:[#allocation2 + $0x181]] }
  0x1a   :  { %v48_v1 = vstv %s325_s0  ;;  %s330_s1 = sld [smem:[#allocation2 + $0x201]] }
  0x1b   :  { %v49_v2 = vstv %s326_s19  ;;  %s331_s24 = sld [smem:[#allocation2 + $0x101]] }
  0x1c   :  { %v50_v3 = vsel %vm45_vm0, %v48_v1, %v49_v2  ;;  %v52_v4 = vstv %s327_s20  ;;  %s332_s25 = sld [smem:[#allocation2 + $0x81]] }
  0x1d   :  { %v53_v5 = vsel %vm44_vm1, %v52_v4, %v50_v3  ;;  %v55_v6 = vstv %s328_s21  ;;  %s333_s26 = sld [smem:[#allocation2 + $0x1]] }
  0x1e   :  { %v56_v7 = vsel %vm43_vm2, %v55_v6, %v53_v5  ;;  %v58_v8 = vstv %s57_s22  ;;  %s334_s27 = sld [smem:[#allocation2 + $0x182]] }
  0x1f   :  { %v62_v9 = vstv %s329_s23  ;;  %s335_s28 = sld [smem:[#allocation2 + $0x202]]  ;;  %v59_v11 = vsel %vm42_vm3, %v58_v8, %v56_v7 }
  0x20   :  { %v63_v12 = vstv %s330_s1  ;;  %s336_s29 = sld [smem:[#allocation2 + $0x102]]  ;;  %v88_v20 = vmul.f32 %v59_v11, %v493_v10 }
  0x21   :  { %v64_v13 = vsel %vm45_vm0, %v62_v9, %v63_v12  ;;  %v66_v14 = vstv %s331_s24  ;;  %s337_s30 = sld [smem:[#allocation2 + $0x82]] }
  0x22   :  { %v67_v16 = vsel %vm44_vm1, %v66_v14, %v64_v13  ;;  %v69_v17 = vstv %s332_s25  ;;  %s338_s3 = sld [smem:[#allocation2 + $0x2]] }
  0x23   :  { %v70_v18 = vsel %vm43_vm2, %v69_v17, %v67_v16  ;;  %v72_v19 = vstv %s333_s26  ;;  %s369_s4 = sld [smem:[#allocation2 + $0x189]] }
  0x24   :  { %v73_v21 = vsel %vm42_vm3, %v72_v19, %v70_v18  ;;  %v76_v22 = vstv %s334_s27  ;;  %s370_s5 = sld [smem:[#allocation2 + $0x209]] }
  0x25   :  { %v77_v23 = vstv %s335_s28  ;;  %v89_v24 = vmul.f32 %v73_v21, %v499_v15  ;;  %s371_s6 = sld [smem:[#allocation2 + $0x109]] }
  0x26   :  { %v78_v25 = vsel %vm45_vm0, %v76_v22, %v77_v23  ;;  %v80_v26 = vstv %s336_s29  ;;  %s372_s7 = sld [smem:[#allocation2 + $0x89]] }
  0x27   :  { %v81_v27 = vsel %vm44_vm1, %v80_v26, %v78_v25  ;;  %v83_v28 = vstv %s337_s30  ;;  %v90_v29 = vadd.f32 %v89_v24, %v88_v20  ;;  %s373_s8 = sld [smem:[#allocation2 + $0x9]] }
  0x28   :  { %v84_v30 = vsel %vm43_vm2, %v83_v28, %v81_v27  ;;  %v86_v31 = vstv %s338_s3  ;;  %s339_s9 = sld [smem:[#allocation2 + $0x183]] }
  0x29   :  { %v87_v32 = vsel %vm42_vm3, %v86_v31, %v84_v30  ;;  %v186_v33 = vstv %s369_s4  ;;  %s340_s10 = sld [smem:[#allocation2 + $0x203]] }
  0x2a   :  { %v517_v34 = vadd.f32 %v90_v29, %v87_v32  ;;  %v187_v35 = vstv %s370_s5  ;;  %s341_s11 = sld [smem:[#allocation2 + $0x103]] }
  0x2b   :  { %v188_v36 = vsel %vm45_vm0, %v186_v33, %v187_v35  ;;  %v190_v37 = vstv %s371_s6  ;;  %s342_s12 = sld [smem:[#allocation2 + $0x83]] }
  0x2c   :  { %v191_v38 = vsel %vm44_vm1, %v190_v37, %v188_v36  ;;  %v193_v39 = vstv %s372_s7  ;;  %228 = vst [vmem:[#allocation7 + $0xc] sm:$0x7] %v517_v34  ;;  %s343_s13 = sld [smem:[#allocation2 + $0x3]]  ;;  %v239_v26 = vand.u32 2147483647, %v517_v34 }
  0x2d   :  { %v194_v40 = vsel %vm43_vm2, %v193_v39, %v191_v38  ;;  %v196_v41 = vstv %s373_s8  ;;  %s344_s14 = sld [smem:[#allocation2 + $0x184]] }
  0x2e   :  { %v528_v42 = vsel %vm42_vm3, %v196_v41, %v194_v40  ;;  %v94_v43 = vstv %s339_s9  ;;  %s345_s17 = sld [smem:[#allocation2 + $0x204]]  ;;  %vm584_vm4 = vcmp.lt.f32.partialorder %v239_v26, 1e-09 }
  0x2f   :  { %226 = vst [vmem:[#allocation7] sm:$0x7] %v528_v42  ;;  %v95_v44 = vstv %s340_s10  ;;  %s346_s18 = sld [smem:[#allocation2 + $0x104]] }
  0x30   :  { %v96_v45 = vsel %vm45_vm0, %v94_v43, %v95_v44  ;;  %v98_v46 = vstv %s341_s11  ;;  %s347_s0 = sld [smem:[#allocation2 + $0x84]] }
  0x31   :  { %v99_v47 = vsel %vm44_vm1, %v98_v46, %v96_v45  ;;  %v101_v48 = vstv %s342_s12  ;;  %s348_s19 = sld [smem:[#allocation2 + $0x4]]  ;;  %v241_v45 = vsel %vm584_vm4, 1e-09, %v517_v34 }
  0x32   :  { %v102_v49 = vsel %vm43_vm2, %v101_v48, %v99_v47  ;;  %v104_v50 = vstv %s343_s13  ;;  %s349_s20 = sld [smem:[#allocation2 + $0x185]]  ;;  %389 = vrcp.f32 %v241_v45 }
  0x33   :  { %v108_v51 = vstv %s344_s14  ;;  %s350_s21 = sld [smem:[#allocation2 + $0x205]]  ;;  %v105_v52 = vsel %vm42_vm3, %v104_v50, %v102_v49 }
  0x34   :  { %v109_v53 = vstv %s345_s17  ;;  %s351_s22 = sld [smem:[#allocation2 + $0x105]]  ;;  %v134_v60 = vmul.f32 %v105_v52, %v493_v10 }
  0x35   :  { %v110_v54 = vsel %vm45_vm0, %v108_v51, %v109_v53  ;;  %v112_v55 = vstv %s346_s18  ;;  %s352_s23 = sld [smem:[#allocation2 + $0x85]] }
  0x36   :  { %v113_v56 = vsel %vm44_vm1, %v112_v55, %v110_v54  ;;  %v115_v57 = vstv %s347_s0  ;;  %s353_s1 = sld [smem:[#allocation2 + $0x5]] }
  0x37   :  { %v116_v58 = vsel %vm43_vm2, %v115_v57, %v113_v56  ;;  %v118_v59 = vstv %s348_s19  ;;  %s374_s24 = sld [smem:[#allocation2 + $0x18a]] }
  0x38   :  { %v119_v61 = vsel %vm42_vm3, %v118_v59, %v116_v58  ;;  %v122_v62 = vstv %s349_s20  ;;  %s375_s25 = sld [smem:[#allocation2 + $0x20a]] }
  0x39   :  { %v123_v63 = vstv %s350_s21  ;;  %v135_v1 = vmul.f32 %v119_v61, %v499_v15  ;;  %s376_s26 = sld [smem:[#allocation2 + $0x10a]] }
  0x3a   :  { %v124_v2 = vsel %vm45_vm0, %v122_v62, %v123_v63  ;;  %v126_v3 = vstv %s351_s22  ;;  %s377_s27 = sld [smem:[#allocation2 + $0x8a]]  ;;  %v292_v63 = vmul.f32 %v517_v34, %v517_v34  ;;  %s455_s22 = smov [#allocation7]  }
  0x3b   :  { %v127_v4 = vsel %vm44_vm1, %v126_v3, %v124_v2  ;;  %v129_v5 = vstv %s352_s23  ;;  %v136_v6 = vadd.f32 %v135_v1, %v134_v60  ;;  %s378_s28 = sld [smem:[#allocation2 + $0xa]]  ;;  %s312_s23 = sshll.u32 %s455_s22, 4  ;;  %s313_s23 = int_to_ptr.vmem [resolvable:$true] %s312_s23 }
  0x3c   :  { %v130_v7 = vsel %vm43_vm2, %v129_v5, %v127_v4  ;;  %v132_v8 = vstv %s353_s1  ;;  %s379_s29 = sld [smem:[#allocation2 + $0x18b]]  ;;  %s425_s1 = scalar_lea.vmem %s313_s23, 768 }
  0x3d   :  { %v133_v9 = vsel %vm42_vm3, %v132_v8, %v130_v7  ;;  %v200_v11 = vstv %s374_s24  ;;  %s380_s30 = sld [smem:[#allocation2 + $0x20b]]  ;;  %p426_p5 = scmp.ne.s32.totalorder %s313_s23, %s425_s1 }
  0x3e   :  { %v557_v12 = vadd.f32 %v136_v6, %v133_v9  ;;  %v201_v13 = vstv %s375_s25  ;;  %s381_s3 = sld [smem:[#allocation2 + $0x10b]]  ;;  %p430_p6 = scmp.lt.s32.totalorder %s313_s23, %s313_s23 }
  0x3f   :  { %v202_v14 = vsel %vm45_vm0, %v200_v11, %v201_v13  ;;  %v204_v16 = vstv %s376_s26  ;;  %s382_s4 = sld [smem:[#allocation2 + $0x8b]]  ;;  %v243_v11 = vsub.f32 -1.0, %v528_v42  ;;  %v245_v13 = vsub.f32 1.0, %v528_v42  ;;  %p431_p7 = scmp.lt.s32.totalorder %s425_s1, %s425_s1 }
  0x40   :  { %v205_v17 = vsel %vm44_vm1, %v204_v16, %v202_v14  ;;  %v207_v18 = vstv %s377_s27  ;;  %232 = vst [vmem:[#allocation7 + $0x10] sm:$0x7] %v557_v12  ;;  %s383_s5 = sld [smem:[#allocation2 + $0xb]]  ;;  %v253_v29 = vand.u32 2147483647, %v557_v12  ;;  %v293_v1 = vmul.f32 %v557_v12, %v557_v12  ;;  %v390_v16 = vpop.eup %389 }
  0x41   :  { %v208_v19 = vsel %vm43_vm2, %v207_v18, %v205_v17  ;;  %v210_v20 = vstv %s378_s28  ;;  %s354_s6 = sld [smem:[#allocation2 + $0x186]]  ;;  %v244_v0 = vmul.f32 %v390_v16, %v243_v11  ;;  %p432_p8 = por %p431_p7, %p430_p6 }
  0x42   :  { %v568_v21 = vsel %vm42_vm3, %v210_v20, %v208_v19  ;;  %v214_v22 = vstv %s379_s29  ;;  %s355_s7 = sld [smem:[#allocation2 + $0x206]]  ;;  %vm590_vm5 = vcmp.lt.f32.partialorder %v253_v29, 1e-09  ;;  %v294_v7 = vadd.f32 %v293_v1, %v292_v63 }
  0x43   :  { %230 = vst [vmem:[#allocation7 + $0x4] sm:$0x7] %v568_v21  ;;  %v215_v23 = vstv %s380_s30  ;;  %s356_s8 = sld [smem:[#allocation2 + $0x106]]  ;;  %v255_v47 = vsel %vm590_vm5, 1e-09, %v557_v12  ;;  %v257_v17 = vsub.f32 -1.0, %v568_v21  ;;  %p433_p9 = pnand %p432_p8, %p426_p5 }
  0x44   :  { %v216_v24 = vsel %vm45_vm0, %v214_v22, %v215_v23  ;;  %v218_v25 = vstv %s381_s3  ;;  %s357_s9 = sld [smem:[#allocation2 + $0x86]]  ;;  %391 = vrcp.f32 %v255_v47  ;;  %v259_v18 = vsub.f32 1.0, %v568_v21 }
  0x45   :  { %v219_v27 = vsel %vm44_vm1, %v218_v25, %v216_v24  ;;  %v221_v28 = vstv %s382_s4  ;;  %s358_s10 = sld [smem:[#allocation2 + $0x6]]  ;;  %v246_v22 = vmul.f32 %v390_v16, %v245_v13 }
  0x46   :  { %v222_v30 = vsel %vm43_vm2, %v221_v28, %v219_v27  ;;  %v224_v31 = vstv %s383_s5  ;;  %s359_s11 = sld [smem:[#allocation2 + $0x187]] }
  0x47   :  { %v581_v32 = vsel %vm42_vm3, %v224_v31, %v222_v30  ;;  %v140_v33 = vstv %s354_s6  ;;  %s360_s12 = sld [smem:[#allocation2 + $0x207]]  ;;  %v247_v25 = vmin.f32 %v244_v0, %v246_v22  ;;  %v250_v26 = vmax.f32 %v244_v0, %v246_v22 }
  0x48   :  { %234 = vst [vmem:[#allocation7 + $0x8] sm:$0x7] %v581_v32  ;;  %v141_v35 = vstv %s355_s7  ;;  %s361_s13 = sld [smem:[#allocation2 + $0x107]]  ;;  %v273_v30 = vsub.f32 -1.0, %v581_v32  ;;  %v275_v31 = vsub.f32 1.0, %v581_v32 }
  0x49   :  { %v142_v37 = vsel %vm45_vm0, %v140_v33, %v141_v35  ;;  %v144_v38 = vstv %s356_s8  ;;  %s362_s14 = sld [smem:[#allocation2 + $0x87]]  ;;  %v248_v42 = vmax.f32 %v247_v25, 0.0  ;;  %v251_v29 = vmax.f32 %v250_v26, 0.0 }
  0x4a   :  { %v145_v40 = vsel %vm44_vm1, %v144_v38, %v142_v37  ;;  %v147_v41 = vstv %s357_s9  ;;  %s363_s17 = sld [smem:[#allocation2 + $0x7]] }
  0x4b   :  { %v148_v43 = vsel %vm43_vm2, %v147_v41, %v145_v40  ;;  %v150_v44 = vstv %s358_s10  ;;  %s364_s18 = sld [smem:[#allocation2 + $0x188]]  ;;  %v249_v36 = vmin.f32 %v248_v42, 100.0  ;;  %v252_v38 = vmin.f32 %v251_v29, 100.0 }
  0x4c   :  { %v154_v46 = vstv %s359_s11  ;;  %s365_s0 = sld [smem:[#allocation2 + $0x208]]  ;;  %v151_v48 = vsel %vm42_vm3, %v150_v44, %v148_v43 }
  0x4d   :  { %v155_v49 = vstv %s360_s12  ;;  %s366_s19 = sld [smem:[#allocation2 + $0x108]]  ;;  %v180_v56 = vmul.f32 %v151_v48, %v493_v10 }
  0x4e   :  { %v156_v50 = vsel %vm45_vm0, %v154_v46, %v155_v49  ;;  %v158_v51 = vstv %s361_s13  ;;  %s367_s20 = sld [smem:[#allocation2 + $0x88]] }
  0x4f   :  { %v159_v52 = vsel %vm44_vm1, %v158_v51, %v156_v50  ;;  %v161_v53 = vstv %s362_s14  ;;  %s368_s21 = sld [smem:[#allocation2 + $0x8]] }
  0x50   :  { %v162_v54 = vsel %vm43_vm2, %v161_v53, %v159_v52  ;;  %v164_v55 = vstv %s363_s17 }
  0x51   :  { %v165_v57 = vsel %vm42_vm3, %v164_v55, %v162_v54  ;;  %v168_v58 = vstv %s364_s18  ;;  %v392_v20 = vpop.eup %391 }
  0x52   :  { %v169_v59 = vstv %s365_s0  ;;  %v181_v60 = vmul.f32 %v165_v57, %v499_v15  ;;  %v258_v23 = vmul.f32 %v392_v20, %v257_v17  ;;  %v260_v24 = vmul.f32 %v392_v20, %v259_v18 }
  0x53   :  { %v170_v61 = vsel %vm45_vm0, %v168_v58, %v169_v59  ;;  %v172_v62 = vstv %s366_s19 }
  0x54   :  { %v173_v10 = vsel %vm44_vm1, %v172_v62, %v170_v61  ;;  %v175_v2 = vstv %s367_s20  ;;  %v182_v3 = vadd.f32 %v181_v60, %v180_v56  ;;  %v261_v27 = vmin.f32 %v258_v23, %v260_v24 }
  0x55   :  { %v176_v4 = vsel %vm43_vm2, %v175_v2, %v173_v10  ;;  %v178_v5 = vstv %s368_s21  ;;  %v264_v28 = vmax.f32 %v258_v23, %v260_v24 }
  0x56   :  { %v179_v15 = vsel %vm42_vm3, %v178_v5, %v176_v4  ;;  %v262_v33 = vmax.f32 %v261_v27, 0.0 }
  0x57   :  { %v183_v6 = vadd.f32 %v182_v3, %v179_v15  ;;  %v265_v21 = vmax.f32 %v264_v28, 0.0 }
  0x58   :  { %v263_v43 = vmin.f32 %v262_v33, 100.0 }
  0x59   :  { %236 = vst [vmem:[#allocation7 + $0x14] sm:$0x7] %v183_v6  ;;  %v295_v8 = vmul.f32 %v183_v6, %v183_v6  ;;  %v269_v9 = vand.u32 2147483647, %v183_v6  ;;  %v266_v46 = vmin.f32 %v265_v21, 100.0 }
  0x5a   :  { %v267_v48 = vmax.f32 %v249_v36, %v263_v43 }
  0x5b   :  { %v296_v14 = vadd.f32 %v295_v8, %v294_v7  ;;  %vm270_vm6 = vcmp.lt.f32.partialorder %v269_v9, 1e-09  ;;  %v268_v50 = vmin.f32 %v252_v38, %v266_v46 }
  0x5c   :  { %v271_v19 = vsel %vm270_vm6, 1e-09, %v183_v6 }
  0x5d   :  { %393 = vrsqrt.f32 %v296_v14 }
  0x5e   :  { %395 = vrcp.f32 %v271_v19 }
  0x6a   :  { %v394_v35 = vpop.eup %393 }
  0x6b   :  { %v396_v37 = vpop.eup %395  ;;  %v298_v39 = vmul.f32 %v394_v35, %v517_v34  ;;  %v301_v40 = vmul.f32 %v394_v35, %v557_v12  ;;  %v304_v41 = vmul.f32 %v394_v35, %v183_v6 }
  0x6c   :  { %v274_v44 = vmul.f32 %v396_v37, %v273_v30  ;;  %v276_v45 = vmul.f32 %v396_v37, %v275_v31 }
  0x6d   :  { %300 = vst [vmem:[#allocation7 + $0x24] sm:$0x7] %v298_v39  ;;  %303 = vst [vmem:[#allocation7 + $0x28] sm:$0x7] %v301_v40 }
  0x6e   :  { %306 = vst [vmem:[#allocation7 + $0x2c] sm:$0x7] %v304_v41  ;;  %v277_v47 = vmin.f32 %v274_v44, %v276_v45  ;;  %v280_v32 = vmax.f32 %v274_v44, %v276_v45 }
  0x70   :  { %v278_v49 = vmax.f32 %v277_v47, 0.0  ;;  %v281_v51 = vmax.f32 %v280_v32, 0.0 }
  0x72   :  { %v279_v52 = vmin.f32 %v278_v49, 100.0  ;;  %v282_v53 = vmin.f32 %v281_v51, 100.0 }
  0x74   :  { %v283_v54 = vmax.f32 %v267_v48, %v279_v52  ;;  %v284_v34 = vmin.f32 %v268_v50, %v282_v53 }
  0x76   :  { %v285_v12 = vmax.f32 %v283_v54, 0.5  ;;  %v288_v55 = vmax.f32 %v284_v34, 0.0 }
  0x78   :  { %287 = vst [vmem:[#allocation7 + $0x18] sm:$0x7] %v285_v12  ;;  %v289_v56 = vmin.f32 %v288_v55, 6.0 }
  0x7a   :  { %291 = vst [vmem:[#allocation7 + $0x1c] sm:$0x7] %v289_v56 }
  0x7b   :  { %436 = shalt.err (!%p433_p9)
}
  0x7c   :  { %318 = dma.vmem_to_hbm [thread:$0]  %s313_s23, 768, %s644_s2, [#allocation4], %s453_s15, %s453_s15, %s454_s16  }
  0x7d   :  { %449 = dma.done.wait [#allocation4], 768  }
  0x7e   :  { %450 = vsyncadd [#allocation4], 4294966528 }
  0x7f   :  { %322 = vsyncpa [#allocation3], 1 }
  0x80   :  { %323 = vsyncpa [#allocation4], 1 }
  0x81   :  { %324 = vsyncpa [#allocation5], 1 }

</bundles_post_ra>
